<compile_context>
chip_gen: v5e
topology: v5e:2x2
jax: 0.10.0
libtpu: 0.0.40
codegen_flags: <defaults>
</compile_context>

<pallas_src>
import jax
import jax.numpy as jnp
from jax.experimental import pallas as pl
from jax.experimental.pallas import tpu as pltpu


def xor_kernel(params_ref, x_ref, o_ref):
    # params_ref: SMEM (9,) f32 = [w1_00, w1_01, w1_10, w1_11, b1_0, b1_1,
    #                              w2_00, w2_01, b2_0]
    # x_ref:      VMEM (2, tb) f32   -- feature-major, batch on lanes
    # o_ref:      VMEM (1, tb) f32   -- lane-dense output
    x0 = x_ref[0:1, :]  # (1, tb)
    x1 = x_ref[1:2, :]  # (1, tb)

    w1_00 = params_ref[0]
    w1_01 = params_ref[1]
    w1_10 = params_ref[2]
    w1_11 = params_ref[3]
    b1_0 = params_ref[4]
    b1_1 = params_ref[5]
    w2_00 = params_ref[6]
    w2_01 = params_ref[7]
    b2_0 = params_ref[8]

    # layer1 (y = x @ W1.T + b1) + ReLU, pure VPU broadcast arithmetic.
    h0 = jnp.maximum(x0 * w1_00 + x1 * w1_01 + b1_0, 0.0)
    h1 = jnp.maximum(x0 * w1_10 + x1 * w1_11 + b1_1, 0.0)

    # layer2 (z = h @ W2.T + b2) + sigmoid (sigmoid -> EUP slot).
    z = h0 * w2_00 + h1 * w2_01 + b2_0
    o_ref[...] = jax.nn.sigmoid(z).astype(o_ref.dtype)


def _round_up(n, m):
    return ((n + m - 1) // m) * m


def xor_forward(x, w1, b1, w2, b2, *, lanes_per_block=512):
    """x: (B, 2) f32; w1: (2,2); b1: (2,); w2: (1,2); b2: (1,). Returns (B, 1)."""
    B = x.shape[0]

    # Pack the 9 scalars for a single SMEM load (row-major w1, b1, w2, b2).
    params = jnp.concatenate(
        [w1.reshape(-1), b1.reshape(-1), w2.reshape(-1), b2.reshape(-1)]
    ).astype(jnp.float32)

    # Batch-as-lanes layout, padded to a multiple of the lane block.
    xt = x.astype(jnp.float32).T                    # (2, B)
    Bp = _round_up(B, 128)
    tb = min(lanes_per_block, Bp)                   # multiple of 128 by construction
    Bp = _round_up(Bp, tb)
    xt = jnp.pad(xt, ((0, 0), (0, Bp - B)))         # (2, Bp)

    grid = (Bp // tb,)

    out = pl.pallas_call(
        xor_kernel,
        out_shape=jax.ShapeDtypeStruct((1, Bp), jnp.float32),
        grid=grid,
        in_specs=[
            pl.BlockSpec(memory_space=pltpu.MemorySpace.SMEM),   # params, whole array
            pl.BlockSpec((2, tb), lambda i: (0, i)),             # x block (lanes = batch)
        ],
        out_specs=pl.BlockSpec((1, tb), lambda i: (0, i)),
        compiler_params=pltpu.CompilerParams(
            dimension_semantics=("parallel",),
        ),
    )(params, xt)

    # Back to PyTorch layout (B, 1), dropping lane padding.
    return out[0, :B].reshape(B, 1)


def init_params(key):
    # Deterministic init mimicking PyTorch Linear default U(-1/sqrt(in), 1/sqrt(in)).
    k1, k2, k3, k4 = jax.random.split(key, 4)
    bound = 1.0 / jnp.sqrt(2.0)
    w1 = jax.random.uniform(k1, (2, 2), jnp.float32, -bound, bound)  # (out=2, in=2)
    b1 = jax.random.uniform(k2, (2,), jnp.float32, -bound, bound)
    w2 = jax.random.uniform(k3, (1, 2), jnp.float32, -bound, bound)  # (out=1, in=2)
    b2 = jax.random.uniform(k4, (1,), jnp.float32, -bound, bound)
    return w1, b1, w2, b2


if __name__ == "__main__":
    key = jax.random.PRNGKey(0)
    kx, kp = jax.random.split(key)

    B = 8
    x = jax.random.normal(kx, (B, 2), jnp.float32)
    w1, b1, w2, b2 = init_params(kp)

    out = xor_forward(x, w1, b1, w2, b2)
    out = jax.block_until_ready(out)

    # Reference in plain JAX (same math as the PyTorch forward).
    h_ref = jnp.maximum(x @ w1.T + b1, 0.0)
    y_ref = jax.nn.sigmoid(h_ref @ w2.T + b2)
    assert out.shape == (B, 1)
    assert jnp.allclose(out, y_ref, atol=1e-5), "mismatch vs reference"

    print("KERNEL_OK")
</pallas_src>

<mosaic_0001>
module attributes {stable_mosaic.version = 11 : i64} {
  func.func @xor_kernel(%arg0: i32, %arg1: memref<9xf32, #tpu.memory_space<smem>>, %arg2: memref<2x128xf32, #tpu.memory_space<vmem>>, %arg3: memref<1x128xf32, #tpu.memory_space<vmem>>) attributes {dimension_semantics = [#tpu.dimension_semantics<parallel>], iteration_bounds = array<i64: 1>, scalar_prefetch = 0 : i64, scratch_operands = 0 : i64, tpu.core_type = #tpu.core_type<tc>, window_params = [{transform_indices = @transform_0, window_bounds = array<i64: 9>}, {transform_indices = @transform_1, window_bounds = array<i64: 2, 128>}, {transform_indices = @transform_2, window_bounds = array<i64: 1, 128>}]} {
    %c0 = arith.constant 0 : index
    %c0_0 = arith.constant 0 : index
    %0 = vector.load %arg2[%c0, %c0_0] : memref<2x128xf32, #tpu.memory_space<vmem>>, vector<1x128xf32>
    %c1 = arith.constant 1 : index
    %c0_1 = arith.constant 0 : index
    %1 = vector.load %arg2[%c1, %c0_1] : memref<2x128xf32, #tpu.memory_space<vmem>>, vector<1x128xf32>
    %c0_2 = arith.constant 0 : index
    %2 = memref.load %arg1[%c0_2] : memref<9xf32, #tpu.memory_space<smem>>
    %c1_3 = arith.constant 1 : index
    %3 = memref.load %arg1[%c1_3] : memref<9xf32, #tpu.memory_space<smem>>
    %c2 = arith.constant 2 : index
    %4 = memref.load %arg1[%c2] : memref<9xf32, #tpu.memory_space<smem>>
    %c3 = arith.constant 3 : index
    %5 = memref.load %arg1[%c3] : memref<9xf32, #tpu.memory_space<smem>>
    %c4 = arith.constant 4 : index
    %6 = memref.load %arg1[%c4] : memref<9xf32, #tpu.memory_space<smem>>
    %c5 = arith.constant 5 : index
    %7 = memref.load %arg1[%c5] : memref<9xf32, #tpu.memory_space<smem>>
    %c6 = arith.constant 6 : index
    %8 = memref.load %arg1[%c6] : memref<9xf32, #tpu.memory_space<smem>>
    %c7 = arith.constant 7 : index
    %9 = memref.load %arg1[%c7] : memref<9xf32, #tpu.memory_space<smem>>
    %c8 = arith.constant 8 : index
    %10 = memref.load %arg1[%c8] : memref<9xf32, #tpu.memory_space<smem>>
    %11 = vector.broadcast %2 : f32 to vector<1x128xf32>
    %12 = arith.mulf %0, %11 : vector<1x128xf32>
    %13 = vector.broadcast %3 : f32 to vector<1x128xf32>
    %14 = arith.mulf %1, %13 : vector<1x128xf32>
    %15 = arith.addf %12, %14 : vector<1x128xf32>
    %16 = vector.broadcast %6 : f32 to vector<1x128xf32>
    %17 = arith.addf %15, %16 : vector<1x128xf32>
    %cst = arith.constant 0.000000e+00 : f32
    %18 = vector.broadcast %cst : f32 to vector<1x128xf32>
    %19 = arith.maximumf %17, %18 : vector<1x128xf32>
    %20 = vector.broadcast %4 : f32 to vector<1x128xf32>
    %21 = arith.mulf %0, %20 : vector<1x128xf32>
    %22 = vector.broadcast %5 : f32 to vector<1x128xf32>
    %23 = arith.mulf %1, %22 : vector<1x128xf32>
    %24 = arith.addf %21, %23 : vector<1x128xf32>
    %25 = vector.broadcast %7 : f32 to vector<1x128xf32>
    %26 = arith.addf %24, %25 : vector<1x128xf32>
    %cst_4 = arith.constant 0.000000e+00 : f32
    %27 = vector.broadcast %cst_4 : f32 to vector<1x128xf32>
    %28 = arith.maximumf %26, %27 : vector<1x128xf32>
    %29 = vector.broadcast %8 : f32 to vector<1x128xf32>
    %30 = arith.mulf %19, %29 : vector<1x128xf32>
    %31 = vector.broadcast %9 : f32 to vector<1x128xf32>
    %32 = arith.mulf %28, %31 : vector<1x128xf32>
    %33 = arith.addf %30, %32 : vector<1x128xf32>
    %34 = vector.broadcast %10 : f32 to vector<1x128xf32>
    %35 = arith.addf %33, %34 : vector<1x128xf32>
    %36 = arith.negf %35 : vector<1x128xf32>
    %37 = math.exp %36 : vector<1x128xf32>
    %cst_5 = arith.constant 1.000000e+00 : f32
    %38 = vector.broadcast %cst_5 : f32 to vector<1x128xf32>
    %39 = arith.addf %38, %37 : vector<1x128xf32>
    %40 = arith.divf %38, %39 : vector<1x128xf32>
    %c0_6 = arith.constant 0 : index
    %c0_7 = arith.constant 0 : index
    %41 = vector.load %arg3[%c0_6, %c0_7] : memref<1x128xf32, #tpu.memory_space<vmem>>, vector<1x128xf32>
    tpu.vector_store %arg3[%c0_6, %c0_7], %40 {strides = array<i32>} : memref<1x128xf32, #tpu.memory_space<vmem>>, vector<1x128xf32>,
    return
  }
  func.func @transform_0(%arg0: i32) -> i32 {
    %c0_i32 = arith.constant 0 : i32
    %c0_i32_0 = arith.constant 0 : i32
    return %c0_i32 : i32
  }
  func.func @transform_1(%arg0: i32) -> (i32, i32) {
    %c0_i32 = arith.constant 0 : i32
    %c0_i32_0 = arith.constant 0 : i32
    return %c0_i32, %arg0 : i32, i32
  }
  func.func @transform_2(%arg0: i32) -> (i32, i32) {
    %c0_i32 = arith.constant 0 : i32
    %c0_i32_0 = arith.constant 0 : i32
    return %c0_i32, %arg0 : i32, i32
  }
}

</mosaic_0001>

<bundles_post_ra>
// kernel: tpu_custom_call.1
= control target key start
LH: loop header
LB: loop body
LE: loop exit
PB: predicated region body
PF: predicated region fallthrough
CT: control target
= control target key end

     0   :  { %7 = vsyncpa [#allocation5], 0  ;;  %s220_s0 = inlined_call_operand.hbm [shape: f32[9], index: 0, kind: input, shape index: {}]   ;;  %s221_s1 = inlined_call_operand.hbm [shape: f32[2,128], index: 1, kind: input, shape index: {}]   ;;  %s222_s2 = inlined_call_operand.hbm [shape: f32[1,128], index: 2, kind: output, shape index: {}]  }
   0x1   :  { %8 = vsyncpa [#allocation3], 0 }
   0x2   :  { %9 = vsyncpa [#allocation4], 0  ;;  %s15_s11 = sshll.u32 %s220_s0, 4  ;;  %s24_s14 = sshll.u32 %s221_s1, 4  ;;  %s16_s11 = int_to_ptr.hbm [resolvable:$true] %s15_s11  ;;  %s25_s14 = int_to_ptr.hbm [resolvable:$true] %s24_s14 }
   0x3   :  { %s193_s15 = smov [#allocation2]   ;;  %s194_s16 = smov [#allocation6]  }
   0x4   :  { %18 = dma.hbm_to_smem %s16_s11, 16, %s193_s15, [#allocation5]  }
   0x5   :  { %s26_s17 = sshll.u32 %s194_s16, 4  ;;  %s27_s17 = int_to_ptr.vmem [resolvable:$true] %s26_s17 }
   0x6   :  { %29 = dma.hbm_to_vmem [thread:$0]  %s25_s14, 32, %s27_s17, [#allocation3]  }
   0x7   :  { %187 = dma.done.wait [#allocation5], 16  }
   0x8   :  { %188 = vsyncadd [#allocation5], 4294967280 }
   0x9   :  { %189 = dma.done.wait [#allocation3], 32  }
   0xa   :  { %190 = vsyncadd [#allocation3], 4294967264 }
   0xb   :  { %38 = sfence }
   0xc   :  { %s41_s18 = sld [smem:[#allocation2]]  ;;  %v39_v0 = vld [vmem:[#allocation6] sm:$0x1]  ;;  %v40_v1 = vld [vmem:[#allocation6 + $0x1] sm:$0x1]  ;;  %s195_s25 = smov [#allocation7]  }
   0xd   :  { %s111_s19 = sld [smem:[#allocation2 + $0x1]]  ;;  %s98_s26 = sshll.u32 %s195_s25, 4  ;;  %s99_s26 = int_to_ptr.vmem [resolvable:$true] %s98_s26 }
   0xe   :  { %s112_s0 = sld [smem:[#allocation2 + $0x2]]  ;;  %s100_s29 = sshll.u32 %s222_s2, 4  ;;  %s101_s29 = int_to_ptr.hbm [resolvable:$true] %s100_s29 }
   0xf   :  { %s113_s20 = sld [smem:[#allocation2 + $0x3]] }
  0x10   :  { %s114_s21 = sld [smem:[#allocation2 + $0x4]] }
  0x11   :  { %s115_s1 = sld [smem:[#allocation2 + $0x5]] }
  0x12   :  { %s116_s22 = sld [smem:[#allocation2 + $0x6]]  ;;  %v50_v2 = vstv %s41_s18 }
  0x13   :  { %s117_s23 = sld [smem:[#allocation2 + $0x7]]  ;;  %v51_v3 = vmul.f32 %v50_v2, %v39_v0  ;;  %v52_v4 = vstv %s111_s19 }
  0x14   :  { %v53_v5 = vmul.f32 %v52_v4, %v40_v1  ;;  %v58_v6 = vstv %s112_s0  ;;  %s118_s24 = sld [smem:[#allocation2 + $0x8]] }
  0x15   :  { %v59_v7 = vmul.f32 %v58_v6, %v39_v0  ;;  %v60_v8 = vstv %s113_s20 }
  0x16   :  { %v54_v9 = vadd.f32 %v53_v5, %v51_v3  ;;  %v55_v10 = vstv %s114_s21  ;;  %v61_v11 = vmul.f32 %v60_v8, %v40_v1 }
  0x17   :  { %v63_v12 = vstv %s115_s1 }
  0x18   :  { %v56_v13 = vadd.f32 %v55_v10, %v54_v9  ;;  %v62_v14 = vadd.f32 %v61_v11, %v59_v7  ;;  %v66_v15 = vstv %s116_s22 }
  0x19   :  { %v68_v18 = vstv %s117_s23 }
  0x1a   :  { %v57_v16 = vmax.f32 %v56_v13, 0.0  ;;  %v64_v17 = vadd.f32 %v63_v12, %v62_v14  ;;  %v71_v22 = vstv %s118_s24 }
  0x1c   :  { %v65_v19 = vmax.f32 %v64_v17, 0.0  ;;  %v67_v20 = vmul.f32 %v66_v15, %v57_v16 }
  0x1e   :  { %v69_v21 = vmul.f32 %v68_v18, %v65_v19 }
  0x20   :  { %v70_v23 = vadd.f32 %v69_v21, %v67_v20 }
  0x22   :  { %v72_v24 = vadd.f32 %v71_v22, %v70_v23 }
  0x24   :  { %v119_v25 = vmul.f32 -1.442695, %v72_v24 }
  0x26   :  { %123 = vpow2.f32 %v119_v25 }
  0x2c   :  { %v124_v26 = vpop.eup %123 }
  0x2d   :  { %v76_v27 = vadd.f32 1.0, %v124_v26 }
  0x2f   :  { %125 = vrcp.f32 %v76_v27  ;;  %v88_v30 = vand.u32 2147483648, %v76_v27  ;;  %vm82_vm0 = vweird.f32 %v76_v27  ;;  %v86_v32 = vand.u32 2147483647, %v76_v27 }
  0x31   :  { %v89_v34 = vor.u32 1.1754944e-38, %v88_v30  ;;  %vm87_vm3 = vcmp.eq.f32.partialorder %v86_v32, 8.507059e+37 }
  0x35   :  { %v126_v28 = vpop.eup %125 }
  0x36   :  { %v78_v29 = vmul.f32 %v126_v28, %v76_v27  ;;  %vm83_vm1 = vweird.f32 %v126_v28 }
  0x37   :  { %vm84_vm2 = vmor %vm82_vm0, %vm83_vm1 }
  0x38   :  { %v79_v31 = vsub.f32 1.0, %v78_v29 }
  0x3a   :  { %v80_v33 = vmul.f32 %v126_v28, %v79_v31 }
  0x3c   :  { %v81_v35 = vadd.f32 %v126_v28, %v80_v33 }
  0x3e   :  { %v85_v36 = vsel %vm84_vm2, %v126_v28, %v81_v35 }
  0x3f   :  { %v90_v37 = vsel %vm87_vm3, %v89_v34, %v85_v36 }
  0x40   :  { %92 = vst [vmem:[#allocation7] sm:$0x1] %v90_v37 }
  0x41   :  { %103 = dma.vmem_to_hbm [thread:$0]  %s99_s26, 16, %s101_s29, [#allocation4]  }
  0x42   :  { %191 = dma.done.wait [#allocation4], 16  }
  0x43   :  { %192 = vsyncadd [#allocation4], 4294967280 }
  0x44   :  { %108 = vsyncpa [#allocation3], 1 }
  0x45   :  { %109 = vsyncpa [#allocation4], 1 }
  0x46   :  { %110 = vsyncpa [#allocation5], 1 }

</bundles_post_ra>
